<compile_context>
chip_gen: v5e
topology: v5e:2x2
jax: 0.10.0
libtpu: 0.0.40
codegen_flags: <defaults>
</compile_context>

<pallas_src>
import jax
import jax.numpy as jnp
from jax.experimental import pallas as pl
from jax.experimental.pallas import tpu as pltpu

BN_EPS = 1e-5
IN_SIZE = 30        # PCA(n_components=30)
H1, H2 = 64, 32
OUT_SIZE = 4        # len(labels)
H1P, H2P = 128, 128  # hidden dims zero-padded to full lane width
MAX_TB = 2048        # batch tile (comfortably within v7x 64 MiB VMEM)


def _round_up(n, m):
    return ((n + m - 1) // m) * m


# ----------------------------- kernel ------------------------------------- #

def mlp_kernel(x_ref, w1_ref, w2_ref, w3_ref, b_ref, o_ref):
    # x tile: [TB, 30] (f32 or bf16). Resident weights (bf16, BN pre-folded):
    # w1 [30,128], w2 [128,128], w3 [128,4]. b_ref: f32 [3,128], row k = folded
    # bias of layer k+1 (zero in padded lanes).
    x = x_ref[...].astype(jnp.bfloat16)

    # fc1 (+ folded bn1) + relu1   (dropout1: identity in eval mode)
    h = jnp.dot(x, w1_ref[...], preferred_element_type=jnp.float32)
    h = jnp.maximum(h + b_ref[0:1, :], 0.0)

    # fc2 (+ folded bn2) + relu2   (dropout2: identity in eval mode)
    h = jnp.dot(h.astype(jnp.bfloat16), w2_ref[...],
                preferred_element_type=jnp.float32)
    h = jnp.maximum(h + b_ref[1:2, :], 0.0)

    # fc3
    o = jnp.dot(h.astype(jnp.bfloat16), w3_ref[...],
                preferred_element_type=jnp.float32)
    o_ref[...] = (o + b_ref[2:3, :OUT_SIZE]).astype(o_ref.dtype)
    # TODO(synk): training-mode dropout (p=0.3) and batch-statistics BN are not
    # implemented; this kernel is the eval/inference forward pass only.


# ----------------------------- wrapper ------------------------------------- #

def improved_neural_network(x, prep):
    """x: [B, IN_SIZE] (f32 or bf16). prep: dict from prepare_params()."""
    B, K = x.shape
    assert K == IN_SIZE

    TB = min(MAX_TB, _round_up(B, 8))
    Bp = _round_up(B, TB)
    if Bp != B:
        x = jnp.pad(x, ((0, Bp - B), (0, 0)))

    out = pl.pallas_call(
        mlp_kernel,
        out_shape=jax.ShapeDtypeStruct((Bp, OUT_SIZE), jnp.float32),
        grid_spec=pltpu.PrefetchScalarGridSpec(
            num_scalar_prefetch=0,
            grid=(Bp // TB,),
            in_specs=[
                pl.BlockSpec((TB, K), lambda i: (i, 0)),        # x (streamed)
                pl.BlockSpec((K, H1P), lambda i: (0, 0)),       # w1 (resident)
                pl.BlockSpec((H1P, H2P), lambda i: (0, 0)),     # w2 (resident)
                pl.BlockSpec((H2P, OUT_SIZE), lambda i: (0, 0)),  # w3 (resident)
                pl.BlockSpec((3, H1P), lambda i: (0, 0)),       # biases
            ],
            out_specs=pl.BlockSpec((TB, OUT_SIZE), lambda i: (i, 0)),
        ),
        compiler_params=pltpu.CompilerParams(
            dimension_semantics=("parallel",),   # megacore split on v7x
        ),
    )(x, prep["w1"], prep["w2"], prep["w3"], prep["b"])

    return out[:B] if Bp != B else out


# ------------------------- parameter handling ------------------------------ #

def init_params(key, input_size, output_size):
    """Synthetic parameters matching the PyTorch module (weights stored as
    [in, out], i.e. transposed vs nn.Linear's [out, in])."""
    ks = jax.random.split(key, 6)

    def lin(kw, kb, fan_in, fan_out):
        bound = 1.0 / jnp.sqrt(fan_in)
        w = jax.random.uniform(kw, (fan_in, fan_out), jnp.float32, -bound, bound)
        b = jax.random.uniform(kb, (1, fan_out), jnp.float32, -bound, bound)
        return w, b

    w1, b1 = lin(ks[0], ks[1], input_size, H1)
    w2, b2 = lin(ks[2], ks[3], H1, H2)
    w3, b3 = lin(ks[4], ks[5], H2, output_size)

    # BatchNorm1d defaults: gamma=1, beta=0, running_mean=0, running_var=1.
    return dict(
        w1=w1, b1=b1,
        g1=jnp.ones((1, H1), jnp.float32), bt1=jnp.zeros((1, H1), jnp.float32),
        m1=jnp.zeros((1, H1), jnp.float32), v1=jnp.ones((1, H1), jnp.float32),
        w2=w2, b2=b2,
        g2=jnp.ones((1, H2), jnp.float32), bt2=jnp.zeros((1, H2), jnp.float32),
        m2=jnp.zeros((1, H2), jnp.float32), v2=jnp.ones((1, H2), jnp.float32),
        w3=w3, b3=b3,
    )


def prepare_params(p):
    """One-time prep: fold eval-mode BN into the linear layers, zero-pad the
    hidden feature dims to 128 lanes, pack biases, cast weights to bf16."""
    s1 = p["g1"] * jax.lax.rsqrt(p["v1"] + BN_EPS)                 # [1, 64]
    w1 = p["w1"] * s1                                              # [30, 64]
    b1 = (p["b1"] - p["m1"]) * s1 + p["bt1"]                       # [1, 64]

    s2 = p["g2"] * jax.lax.rsqrt(p["v2"] + BN_EPS)                 # [1, 32]
    w2 = p["w2"] * s2                                              # [64, 32]
    b2 = (p["b2"] - p["m2"]) * s2 + p["bt2"]                       # [1, 32]

    w3, b3 = p["w3"], p["b3"]                                      # [32, 4], [1, 4]

    w1p = jnp.zeros((IN_SIZE, H1P), jnp.float32).at[:, :H1].set(w1)
    w2p = jnp.zeros((H1P, H2P), jnp.float32).at[:H1, :H2].set(w2)
    w3p = jnp.zeros((H2P, OUT_SIZE), jnp.float32).at[:H2, :].set(w3)

    b = jnp.zeros((3, H1P), jnp.float32)
    b = b.at[0, :H1].set(b1[0]).at[1, :H2].set(b2[0]).at[2, :OUT_SIZE].set(b3[0])

    return dict(
        w1=w1p.astype(jnp.bfloat16),
        w2=w2p.astype(jnp.bfloat16),
        w3=w3p.astype(jnp.bfloat16),
        b=b,
    )


# ----------------------------- references ---------------------------------- #

def reference_forward_bf16(x, prep):
    """Pure-JAX reference with the same bf16 operand rounding as the kernel."""
    f32 = jnp.float32
    xb = x.astype(jnp.bfloat16).astype(f32)
    w1 = prep["w1"].astype(f32)
    w2 = prep["w2"].astype(f32)
    w3 = prep["w3"].astype(f32)
    b = prep["b"]
    h = jnp.maximum(xb @ w1 + b[0:1, :], 0.0)
    h = jnp.maximum(h.astype(jnp.bfloat16).astype(f32) @ w2 + b[1:2, :], 0.0)
    return h.astype(jnp.bfloat16).astype(f32) @ w3 + b[2:3, :OUT_SIZE]


def reference_forward_f32(x, p):
    """Original (unfolded, full-f32) module semantics."""
    h = x @ p["w1"] + p["b1"]
    h = (h - p["m1"]) / jnp.sqrt(p["v1"] + BN_EPS) * p["g1"] + p["bt1"]
    h = jnp.maximum(h, 0.0)
    h = h @ p["w2"] + p["b2"]
    h = (h - p["m2"]) / jnp.sqrt(p["v2"] + BN_EPS) * p["g2"] + p["bt2"]
    h = jnp.maximum(h, 0.0)
    return h @ p["w3"] + p["b3"]


# ------------------------------- main --------------------------------------- #

if __name__ == "__main__":
    key = jax.random.PRNGKey(0)
    k_x, k_p = jax.random.split(key)

    batch = 8
    x = jax.random.normal(k_x, (batch, IN_SIZE), jnp.float32)
    raw_params = init_params(k_p, IN_SIZE, OUT_SIZE)
    prep = prepare_params(raw_params)

    out = improved_neural_network(x, prep)
    out = jax.block_until_ready(out)
    assert out.shape == (batch, OUT_SIZE)

    # Tight check against a reference that applies the same bf16 rounding.
    ref_bf16 = reference_forward_bf16(x, prep)
    assert jnp.allclose(out, ref_bf16, atol=2e-3, rtol=2e-3), (
        float(jnp.max(jnp.abs(out - ref_bf16))))

    # Loose check against the original full-f32 module semantics.
    ref_f32 = reference_forward_f32(x, raw_params)
    assert jnp.allclose(out, ref_f32, atol=5e-2, rtol=5e-2), (
        float(jnp.max(jnp.abs(out - ref_f32))))

    print("KERNEL_OK")
</pallas_src>

<mosaic_0001>
module attributes {stable_mosaic.version = 11 : i64} {
  func.func @mlp_kernel(%arg0: i32, %arg1: memref<8x30xf32, #tpu.memory_space<vmem>>, %arg2: memref<30x128xbf16, #tpu.memory_space<vmem>>, %arg3: memref<128x128xbf16, #tpu.memory_space<vmem>>, %arg4: memref<128x4xbf16, #tpu.memory_space<vmem>>, %arg5: memref<3x128xf32, #tpu.memory_space<vmem>>, %arg6: memref<8x4xf32, #tpu.memory_space<vmem>>) attributes {dimension_semantics = [#tpu.dimension_semantics<parallel>], iteration_bounds = array<i64: 1>, scalar_prefetch = 0 : i64, scratch_operands = 0 : i64, tpu.core_type = #tpu.core_type<tc>, window_params = [{transform_indices = @transform_0, window_bounds = array<i64: 8, 30>}, {pipeline_mode = #tpu.pipeline_mode<synchronous>, transform_indices = @transform_1, window_bounds = array<i64: 30, 128>}, {pipeline_mode = #tpu.pipeline_mode<synchronous>, transform_indices = @transform_2, window_bounds = array<i64: 128, 128>}, {pipeline_mode = #tpu.pipeline_mode<synchronous>, transform_indices = @transform_3, window_bounds = array<i64: 128, 4>}, {pipeline_mode = #tpu.pipeline_mode<synchronous>, transform_indices = @transform_4, window_bounds = array<i64: 3, 128>}, {transform_indices = @transform_5, window_bounds = array<i64: 8, 4>}]} {
    %c0 = arith.constant 0 : index
    %c0_0 = arith.constant 0 : index
    %0 = vector.load %arg1[%c0, %c0_0] : memref<8x30xf32, #tpu.memory_space<vmem>>, vector<8x30xf32>
    %1 = arith.truncf %0 : vector<8x30xf32> to vector<8x30xbf16>
    %c0_1 = arith.constant 0 : index
    %c0_2 = arith.constant 0 : index
    %2 = vector.load %arg2[%c0_1, %c0_2] : memref<30x128xbf16, #tpu.memory_space<vmem>>, vector<30x128xbf16>
    %cst = arith.constant dense<0.000000e+00> : vector<8x128xf32>
    %3 = tpu.matmul %1, %2, %cst {dimension_numbers = #tpu.dot_dimension_numbers<[1], [0], [0], [1], [0, 0, 1, 1], [], []>} : vector<8x30xbf16>, vector<30x128xbf16>, vector<8x128xf32> -> vector<8x128xf32>
    %c0_3 = arith.constant 0 : index
    %c0_4 = arith.constant 0 : index
    %4 = vector.load %arg5[%c0_3, %c0_4] : memref<3x128xf32, #tpu.memory_space<vmem>>, vector<1x128xf32>
    %5 = vector.broadcast %4 : vector<1x128xf32> to vector<8x128xf32>
    %6 = arith.addf %3, %5 : vector<8x128xf32>
    %cst_5 = arith.constant 0.000000e+00 : f32
    %7 = vector.broadcast %cst_5 : f32 to vector<8x128xf32>
    %8 = arith.maximumf %6, %7 : vector<8x128xf32>
    %9 = arith.truncf %8 : vector<8x128xf32> to vector<8x128xbf16>
    %c0_6 = arith.constant 0 : index
    %c0_7 = arith.constant 0 : index
    %10 = vector.load %arg3[%c0_6, %c0_7] : memref<128x128xbf16, #tpu.memory_space<vmem>>, vector<128x128xbf16>
    %cst_8 = arith.constant dense<0.000000e+00> : vector<8x128xf32>
    %11 = tpu.matmul %9, %10, %cst_8 {dimension_numbers = #tpu.dot_dimension_numbers<[1], [0], [0], [1], [0, 0, 1, 1], [], []>} : vector<8x128xbf16>, vector<128x128xbf16>, vector<8x128xf32> -> vector<8x128xf32>
    %c1 = arith.constant 1 : index
    %c0_9 = arith.constant 0 : index
    %12 = vector.load %arg5[%c1, %c0_9] : memref<3x128xf32, #tpu.memory_space<vmem>>, vector<1x128xf32>
    %13 = vector.broadcast %12 : vector<1x128xf32> to vector<8x128xf32>
    %14 = arith.addf %11, %13 : vector<8x128xf32>
    %cst_10 = arith.constant 0.000000e+00 : f32
    %15 = vector.broadcast %cst_10 : f32 to vector<8x128xf32>
    %16 = arith.maximumf %14, %15 : vector<8x128xf32>
    %17 = arith.truncf %16 : vector<8x128xf32> to vector<8x128xbf16>
    %c0_11 = arith.constant 0 : index
    %c0_12 = arith.constant 0 : index
    %18 = vector.load %arg4[%c0_11, %c0_12] : memref<128x4xbf16, #tpu.memory_space<vmem>>, vector<128x4xbf16>
    %cst_13 = arith.constant dense<0.000000e+00> : vector<8x4xf32>
    %19 = tpu.matmul %17, %18, %cst_13 {dimension_numbers = #tpu.dot_dimension_numbers<[1], [0], [0], [1], [0, 0, 1, 1], [], []>} : vector<8x128xbf16>, vector<128x4xbf16>, vector<8x4xf32> -> vector<8x4xf32>
    %c2 = arith.constant 2 : index
    %c0_14 = arith.constant 0 : index
    %20 = vector.load %arg5[%c2, %c0_14] : memref<3x128xf32, #tpu.memory_space<vmem>>, vector<1x4xf32>
    %21 = vector.broadcast %20 : vector<1x4xf32> to vector<8x4xf32>
    %22 = arith.addf %19, %21 : vector<8x4xf32>
    %c0_15 = arith.constant 0 : index
    %c0_16 = arith.constant 0 : index
    %23 = vector.load %arg6[%c0_15, %c0_16] : memref<8x4xf32, #tpu.memory_space<vmem>>, vector<8x4xf32>
    tpu.vector_store %arg6[%c0_15, %c0_16], %22 {strides = array<i32>} : memref<8x4xf32, #tpu.memory_space<vmem>>, vector<8x4xf32>,
    return
  }
  func.func @transform_0(%arg0: i32) -> (i32, i32) {
    %c0_i32 = arith.constant 0 : i32
    %c0_i32_0 = arith.constant 0 : i32
    return %arg0, %c0_i32 : i32, i32
  }
  func.func @transform_1(%arg0: i32) -> (i32, i32) {
    %c0_i32 = arith.constant 0 : i32
    %c0_i32_0 = arith.constant 0 : i32
    %c0_i32_1 = arith.constant 0 : i32
    return %c0_i32, %c0_i32_0 : i32, i32
  }
  func.func @transform_2(%arg0: i32) -> (i32, i32) {
    %c0_i32 = arith.constant 0 : i32
    %c0_i32_0 = arith.constant 0 : i32
    %c0_i32_1 = arith.constant 0 : i32
    return %c0_i32, %c0_i32_0 : i32, i32
  }
  func.func @transform_3(%arg0: i32) -> (i32, i32) {
    %c0_i32 = arith.constant 0 : i32
    %c0_i32_0 = arith.constant 0 : i32
    %c0_i32_1 = arith.constant 0 : i32
    return %c0_i32, %c0_i32_0 : i32, i32
  }
  func.func @transform_4(%arg0: i32) -> (i32, i32) {
    %c0_i32 = arith.constant 0 : i32
    %c0_i32_0 = arith.constant 0 : i32
    %c0_i32_1 = arith.constant 0 : i32
    return %c0_i32, %c0_i32_0 : i32, i32
  }
  func.func @transform_5(%arg0: i32) -> (i32, i32) {
    %c0_i32 = arith.constant 0 : i32
    %c0_i32_0 = arith.constant 0 : i32
    return %arg0, %c0_i32 : i32, i32
  }
}

</mosaic_0001>

<bundles_post_ra>
// kernel: tpu_custom_call.1
= control target key start
LH: loop header
LB: loop body
LE: loop exit
PB: predicated region body
PF: predicated region fallthrough
CT: control target
= control target key end

     0   :  { %10 = vsyncpa [#allocation3], 0  ;;  %s544_s0 = inlined_call_operand.hbm [shape: f32[8,30], index: 0, kind: input, shape index: {}]   ;;  %s545_s1 = inlined_call_operand.hbm [shape: bf16[30,128], index: 1, kind: input, shape index: {}]   ;;  %s546_s2 = inlined_call_operand.vmem [shape: bf16[128,128], index: 2, kind: input, shape index: {}]   ;;  %s547_s3 = inlined_call_operand.vmem [shape: bf16[128,4], index: 3, kind: input, shape index: {}]   ;;  %s548_s4 = inlined_call_operand.hbm [shape: f32[3,128], index: 4, kind: input, shape index: {}]   ;;  %s549_s5 = inlined_call_operand.vmem [shape: f32[8,4], index: 5, kind: output, shape index: {}]  }
   0x1   :  { %11 = vsyncpa [#allocation5], 0  ;;  %s27_s20 = sshll.u32 %s545_s1, 4  ;;  %s449_s21 = smov [#allocation4]   ;;  %s28_s20 = int_to_ptr.hbm [resolvable:$true] %s27_s20 }
   0x2   :  { %s29_s22 = sshll.u32 %s449_s21, 4  ;;  %s17_s25 = sshll.u32 %s544_s0, 4  ;;  %s30_s22 = int_to_ptr.vmem [resolvable:$true] %s29_s22  ;;  %s18_s25 = int_to_ptr.hbm [resolvable:$true] %s17_s25 }
   0x3   :  { %s450_s26 = smov 64   ;;  %s451_s27 = smov 4  }
   0x4   :  { %35 = dma.hbm_to_vmem [thread:$0]  %s28_s20, 256, %s30_s22, [#allocation5], %s450_s26, %s450_s26, %s451_s27  }
   0x5   :  { %s452_s28 = smov [#allocation2]   ;;  %s45_s7 = sshll.u32 %s548_s4, 4  ;;  %s46_s7 = int_to_ptr.hbm [resolvable:$true] %s45_s7 }
   0x6   :  { %s19_s29 = sshll.u32 %s452_s28, 4  ;;  %s453_s1 = smov [#allocation6]   ;;  %s20_s29 = int_to_ptr.vmem [resolvable:$true] %s19_s29 }
   0x7   :  { %22 = dma.hbm_to_vmem [thread:$0]  %s18_s25, 128, %s20_s29, [#allocation3]  }
   0x8   :  { %s47_s8 = sshll.u32 %s453_s1, 4  ;;  %s48_s8 = int_to_ptr.vmem [resolvable:$true] %s47_s8 }
   0x9   :  { %50 = dma.hbm_to_vmem [thread:$0]  %s46_s7, 64, %s48_s8, [#allocation5]  }
   0xa   :  { %445 = dma.done.wait [#allocation3], 128  }
   0xb   :  { %446 = vsyncadd [#allocation3], 4294967168 }
   0xc   :  { %447 = dma.done.wait [#allocation5], 320  }
   0xd   :  { %448 = vsyncadd [#allocation5], 4294966976  ;;  %v280_v0 = vld [vmem:[#allocation4 + $0x8] sm:$0xf]  ;;  %v348_v1 = vld [vmem:[#allocation4 + $0x8] sm:$0x70] }
   0xe   :  { %vm87_vm0 = vcmask 1046528   ;;  %v281_v2 = vor.u32 %v348_v1, %v280_v0  ;;  %v356_v3 = vld [vmem:[%s546_s2 + $0x38] sm:$0xff]  ;;  %v347_v5 = vld [vmem:[#allocation4] sm:$0xff]  ;;  %v355_v6 = vld [vmem:[%s546_s2 + $0x30] sm:$0xff]  ;;  %vm83_vm1 = vcmask 244736   ;;  %vm266_vm2 = vcmask 31744  }
   0xf   :  { %172 = vmatpush.bf16.msra.mxu1 %v356_v3  ;;  %v64_v7 = vld [vmem:[#allocation2] sm:$0xff]  ;;  %v354_v9 = vld [vmem:[%s546_s2 + $0x28] sm:$0xff]  ;;  %v352_v11 = vld [vmem:[%s546_s2 + $0x18] sm:$0xff] }
  0x10   :  { %v89_v4 = vsel %vm87_vm0, %v281_v2, 0  ;;  %v65_v8 = vpack.c.bf16 %v64_v7, %v64_v7  ;;  %v353_v10 = vld [vmem:[%s546_s2 + $0x20] sm:$0xff]  ;;  %v351_v12 = vld [vmem:[%s546_s2 + $0x10] sm:$0xff]  ;;  %v350_v13 = vld [vmem:[%s546_s2 + $0x8] sm:$0xff] }
  0x11   :  { %97 = vmatpush.bf16.msra.mxu0 %v89_v4  ;;  %v349_v14 = vld [vmem:[%s546_s2] sm:$0xff]  ;;  %v364_v15 = vld [vmem:[%s547_s3 + $0x38] sm:$0xff]  ;;  %v363_v16 = vld [vmem:[%s547_s3 + $0x30] sm:$0xff] }
  0x12   :  { %253 = vmatpush.bf16.msra.mxu2 %v364_v15  ;;  %v362_v17 = vld [vmem:[%s547_s3 + $0x28] sm:$0xff]  ;;  %v361_v18 = vld [vmem:[%s547_s3 + $0x20] sm:$0xff]  ;;  %v360_v19 = vld [vmem:[%s547_s3 + $0x18] sm:$0xff] }
  0x13   :  { %173 = vmatpush.bf16.msra.mxu1 %v355_v6  ;;  %v359_v20 = vld [vmem:[%s547_s3 + $0x10] sm:$0xff]  ;;  %v370_v21 = vld [vmem:[#allocation6] ss:$0 sm:$0xff]  ;;  %v358_v27 = vld [vmem:[%s547_s3 + $0x8] sm:$0xff] }
  0x14   :  { %v357_v28 = vld [vmem:[%s547_s3] sm:$0xff]  ;;  %v371_v29 = vld [vmem:[#allocation6 + $0x1] ss:$0 sm:$0xff]  ;;  %v372_v35 = vld [vmem:[#allocation6 + $0x2] ss:$0 sm:$0xff] }
  0x15   :  { %98 = vmatpush.bf16.msra.mxu0 %v347_v5 }
  0x16   :  { %254 = vmatpush.bf16.msra.mxu2 %v363_v16 }
  0x17   :  { %174 = vmatpush.bf16.msra.mxu1 %v354_v9 }
  0x18   :  { %282 = vmatmul.msk.bf16.vlgmr.msra.gmra.mxu0 %vm83_vm1, %v65_v8 }
  0x1a   :  { %255 = vmatpush.bf16.msra.mxu2 %v362_v17 }
  0x1b   :  { %175 = vmatpush.bf16.msra.mxu1 %v353_v10 }
  0x1e   :  { %256 = vmatpush.bf16.msra.mxu2 %v361_v18 }
  0x1f   :  { %176 = vmatpush.bf16.msra.mxu1 %v352_v11 }
  0x22   :  { %257 = vmatpush.bf16.msra.mxu2 %v360_v19 }
  0x23   :  { %177 = vmatpush.bf16.msra.mxu1 %v351_v12 }
  0x26   :  { %258 = vmatpush.bf16.msra.mxu2 %v359_v20 }
  0x27   :  { %178 = vmatpush.bf16.msra.mxu1 %v350_v13 }
  0x2a   :  { %259 = vmatpush.bf16.msra.mxu2 %v358_v27 }
  0x2b   :  { %179 = vmatpush.bf16.msra.mxu1 %v349_v14 }
  0x2e   :  { %260 = vmatpush.bf16.msra.mxu2 %v357_v28 }
  0x95   :  { %v100_v22 = vpop.f32.mrf.mxu0 }
  0x96   :  { %v101_v23 = vadd.f32 %v370_v21, %v100_v22 }
  0x98   :  { %v104_v24 = vmax.f32 %v101_v23, 0.0 }
  0x9a   :  { %v105_v25 = vpack.c.bf16 %v104_v24, %v104_v24 }
  0x9c   :  { %180 = vmatmul.bf16.vlgmr.msra.gmra.mxu1 %v105_v25 }
  0x9d   :  { %v102_v26 = vpop.f32.mrf.mxu0 }
 0x119   :  { %v181_v30 = vpop.f32.mrf.mxu1 }
 0x11a   :  { %v182_v31 = vadd.f32 %v371_v29, %v181_v30 }
 0x11c   :  { %v185_v32 = vmax.f32 %v182_v31, 0.0 }
 0x11e   :  { %v186_v33 = vpack.c.bf16 %v185_v32, %v185_v32 }
 0x120   :  { %261 = vmatmul.bf16.vlgmr.msra.gmra.mxu2 %v186_v33 }
 0x121   :  { %v183_v34 = vpop.f32.mrf.mxu1 }
 0x1a3   :  { %v262_v36 = vpop.f32.mrf.mxu2 }
 0x1a4   :  { %v263_v37 = vadd.f32 %v372_v35, %v262_v36 }
 0x1a6   :  { %267 = vst.msk [vmem:[%s549_s5] sm:$0xff] %vm266_vm2, %v263_v37 }
 0x1ab   :  { %v264_v38 = vpop.f32.mrf.mxu2 }
 0x1ac   :  { %272 = vsyncpa [#allocation3], 1 }
 0x1ad   :  { %273 = vsyncpa [#allocation5], 1 }

</bundles_post_ra>
